<compile_context>
chip_gen: v6e
topology: v6e:2x2x1
jax: 0.10.0
libtpu: 0.0.40
codegen_flags: <defaults>
</compile_context>

<pallas_src>
import jax
import jax.numpy as jnp
from jax.experimental import pallas as pl
from jax.experimental.pallas import tpu as pltpu


def _fused_heads_kernel(x_ref, w_ref, b_ref, o_ref):
    # x_ref: (1, Cin, thw)   w_ref: (Cout, Cin)   b_ref: (Cout, 1)   o_ref: (1, Cout, thw)
    x = x_ref[0]                                                    # (Cin, thw)
    acc = jnp.dot(w_ref[...], x, preferred_element_type=jnp.float32)  # (Cout, thw)
    o_ref[0] = (acc + b_ref[...]).astype(o_ref.dtype)


def _fused_heads_matmul(x_nchw, w_all, b_all, *, tile_hw=512):
    """Per-pixel 1x1 conv computed in NCHW layout.
    x_nchw: (N, Cin, H, W); w_all: (Cout, Cin); b_all: (Cout,).
    Returns (N, Cout, H*W)."""
    N, Cin, H, W = x_nchw.shape
    Cout = w_all.shape[0]
    HW = H * W

    x3 = x_nchw.reshape(N, Cin, HW)          # free reshape (stays NCHW-contiguous)
    b2d = b_all.reshape(Cout, 1)

    # Lane tile: multiple of 128 when possible, else the full (small) HW extent.
    if HW >= 128:
        thw = max(128, (min(tile_hw, HW) // 128) * 128)
    else:
        thw = HW
    grid = (N, pl.cdiv(HW, thw))

    cost = pl.CostEstimate(
        flops=2 * N * HW * Cin * Cout,
        transcendentals=0,
        bytes_accessed=4 * (N * Cin * HW + Cout * Cin + Cout + N * Cout * HW),
    )

    return pl.pallas_call(
        _fused_heads_kernel,
        out_shape=jax.ShapeDtypeStruct((N, Cout, HW), x_nchw.dtype),
        grid_spec=pltpu.PrefetchScalarGridSpec(
            num_scalar_prefetch=0,
            grid=grid,
            in_specs=[
                pl.BlockSpec((1, Cin, thw), lambda n, j: (n, 0, j)),  # activation tile (read once)
                pl.BlockSpec((Cout, Cin), lambda n, j: (0, 0)),       # fused weights (resident)
                pl.BlockSpec((Cout, 1), lambda n, j: (0, 0)),         # fused bias (resident)
            ],
            out_specs=pl.BlockSpec((1, Cout, thw), lambda n, j: (n, 0, j)),
        ),
        compiler_params=pltpu.CompilerParams(
            dimension_semantics=("parallel", "parallel")),
        cost_estimate=cost,
    )(x3, w_all, b2d)


def retinaface_heads_level(x_nchw, wb, bb, wc, bc, wl, bl, *, num_anchors, tile_hw=512):
    """One FPN level: fused Bbox/Class/Landmark heads.
    Returns (bbox (N,HW*A,4), cls_log_softmax (N,HW*A,2), ldm (N,HW*A,10))."""
    N, Cin, H, W = x_nchw.shape
    A = num_anchors
    HW = H * W

    # Concatenate the three heads' 1x1-conv weights so x is read from HBM once.
    w_all = jnp.concatenate([wb, wc, wl], axis=0)    # (16A, Cin)
    b_all = jnp.concatenate([bb, bc, bl], axis=0)    # (16A,)

    out = _fused_heads_matmul(x_nchw, w_all, b_all, tile_hw=tile_hw)   # (N, 16A, HW)

    # Tiny epilogue on the 16A-channel result: equivalent to permute(0,2,3,1).
    out_nhwc = jnp.transpose(out, (0, 2, 1))         # (N, HW, 16A)
    bbox = out_nhwc[:, :, 0:4 * A].reshape(N, HW * A, 4)
    cls = out_nhwc[:, :, 4 * A:6 * A].reshape(N, HW, A, 2)
    cls = jax.nn.log_softmax(cls, axis=-1).reshape(N, HW * A, 2)
    ldm = out_nhwc[:, :, 6 * A:16 * A].reshape(N, HW * A, 10)
    return bbox, cls, ldm


def retinaface_heads(features, head_params, *, num_anchors, tile_hw=512):
    """Mirrors the head section of RetinaFace.forward: per-level fused heads,
    concatenated over FPN levels along dim 1.
    features: list of (N, Cin, H, W); head_params: per-level dicts wb/bb/wc/bc/wl/bl."""
    bboxes, clss, ldms = [], [], []
    for x, p in zip(features, head_params):
        b, c, l = retinaface_heads_level(
            x, p["wb"], p["bb"], p["wc"], p["bc"], p["wl"], p["bl"],
            num_anchors=num_anchors, tile_hw=tile_hw)
        bboxes.append(b)
        clss.append(c)
        ldms.append(l)
    return (jnp.concatenate(bboxes, axis=1),
            jnp.concatenate(clss, axis=1),
            jnp.concatenate(ldms, axis=1))


if __name__ == "__main__":
    # TODO(synk): the backbone (IntermediateLayerGetter), FPN/ContextModule (3x3 convs,
    # BatchNorm, nearest interpolate) and Anchors/RegressionTransform/LossLayer have no
    # clean single-kernel Pallas equivalent here; this script implements the fused
    # detection heads that RetinaFace.forward applies to each FPN feature map.
    N, Cin, A = 2, 64, 3
    level_hw = [(16, 16), (8, 8), (4, 4)]   # small FPN-like pyramid

    key = jax.random.PRNGKey(0)
    features, head_params = [], []
    for (H, W) in level_hw:
        key, kx, kwb, kbb, kwc, kbc, kwl, kbl = jax.random.split(key, 8)
        x = jax.random.normal(kx, (N, Cin, H, W), dtype=jnp.float32)
        wb = jax.random.normal(kwb, (4 * A, Cin), dtype=jnp.float32) * 0.05
        bb = jax.random.normal(kbb, (4 * A,), dtype=jnp.float32) * 0.05
        wc = jax.random.normal(kwc, (2 * A, Cin), dtype=jnp.float32) * 0.05
        bc = jax.random.normal(kbc, (2 * A,), dtype=jnp.float32) * 0.05
        wl = jax.random.normal(kwl, (10 * A, Cin), dtype=jnp.float32) * 0.05
        bl = jax.random.normal(kbl, (10 * A,), dtype=jnp.float32) * 0.05
        features.append(x)
        head_params.append(dict(wb=wb, bb=bb, wc=wc, bc=bc, wl=wl, bl=bl))

    bbox, cls, ldm = retinaface_heads(features, head_params, num_anchors=A, tile_hw=512)
    bbox, cls, ldm = jax.block_until_ready((bbox, cls, ldm))

    # Plain-JAX reference matching the PyTorch head semantics.
    def ref_level(x, p):
        n, _, h, w = x.shape
        def conv1x1(wt, bt):
            return jnp.einsum("nchw,oc->nhwo", x, wt) + bt
        rb = conv1x1(p["wb"], p["bb"]).reshape(n, -1, 4)
        rc = conv1x1(p["wc"], p["bc"]).reshape(n, h, w, A, 2)
        rc = jax.nn.log_softmax(rc, axis=-1).reshape(n, -1, 2)
        rl = conv1x1(p["wl"], p["bl"]).reshape(n, -1, 10)
        return rb, rc, rl

    refs = [ref_level(x, p) for x, p in zip(features, head_params)]
    ref_bbox = jnp.concatenate([r[0] for r in refs], axis=1)
    ref_cls = jnp.concatenate([r[1] for r in refs], axis=1)
    ref_ldm = jnp.concatenate([r[2] for r in refs], axis=1)

    total_anchors = sum(h * w * A for h, w in level_hw)
    assert bbox.shape == (N, total_anchors, 4)
    assert cls.shape == (N, total_anchors, 2)
    assert ldm.shape == (N, total_anchors, 10)
    assert jnp.allclose(bbox, ref_bbox, atol=1e-4, rtol=1e-4)
    assert jnp.allclose(cls, ref_cls, atol=1e-4, rtol=1e-4)
    assert jnp.allclose(ldm, ref_ldm, atol=1e-4, rtol=1e-4)

    print("KERNEL_OK")
</pallas_src>

<mosaic_0001>
module attributes {stable_mosaic.version = 11 : i64} {
  func.func @_fused_heads_kernel(%arg0: i32, %arg1: i32, %arg2: memref<1x64x256xf32, #tpu.memory_space<vmem>>, %arg3: memref<48x64xf32, #tpu.memory_space<vmem>>, %arg4: memref<48x1xf32, #tpu.memory_space<vmem>>, %arg5: memref<1x48x256xf32, #tpu.memory_space<vmem>>) attributes {dimension_semantics = [#tpu.dimension_semantics<parallel>, #tpu.dimension_semantics<parallel>], iteration_bounds = array<i64: 2, 1>, scalar_prefetch = 0 : i64, scratch_operands = 0 : i64, tpu.core_type = #tpu.core_type<tc>, window_params = [{transform_indices = @transform_0, window_bounds = array<i64: 1, 64, 256>}, {pipeline_mode = #tpu.pipeline_mode<synchronous>, transform_indices = @transform_1, window_bounds = array<i64: 48, 64>}, {pipeline_mode = #tpu.pipeline_mode<synchronous>, transform_indices = @transform_2, window_bounds = array<i64: 48, 1>}, {transform_indices = @transform_3, window_bounds = array<i64: 1, 48, 256>}]} {
    %c0 = arith.constant 0 : index
    %c0_0 = arith.constant 0 : index
    %c0_1 = arith.constant 0 : index
    %0 = vector.load %arg2[%c0, %c0_0, %c0_1] : memref<1x64x256xf32, #tpu.memory_space<vmem>>, vector<1x64x256xf32>
    %1 = vector.shape_cast %0 : vector<1x64x256xf32> to vector<64x256xf32>
    %c0_2 = arith.constant 0 : index
    %c0_3 = arith.constant 0 : index
    %2 = vector.load %arg3[%c0_2, %c0_3] : memref<48x64xf32, #tpu.memory_space<vmem>>, vector<48x64xf32>
    %cst = arith.constant dense<0.000000e+00> : vector<48x256xf32>
    %3 = tpu.matmul %2, %1, %cst {dimension_numbers = #tpu.dot_dimension_numbers<[1], [0], [0], [1], [0, 0, 1, 1], [], []>} : vector<48x64xf32>, vector<64x256xf32>, vector<48x256xf32> -> vector<48x256xf32>
    %c0_4 = arith.constant 0 : index
    %c0_5 = arith.constant 0 : index
    %4 = vector.load %arg4[%c0_4, %c0_5] : memref<48x1xf32, #tpu.memory_space<vmem>>, vector<48x1xf32>
    %5 = vector.broadcast %4 : vector<48x1xf32> to vector<48x256xf32>
    %6 = arith.addf %3, %5 : vector<48x256xf32>
    %c0_6 = arith.constant 0 : index
    %c0_7 = arith.constant 0 : index
    %c0_8 = arith.constant 0 : index
    %7 = vector.load %arg5[%c0_6, %c0_7, %c0_8] : memref<1x48x256xf32, #tpu.memory_space<vmem>>, vector<1x48x256xf32>
    %8 = vector.shape_cast %7 : vector<1x48x256xf32> to vector<48x256xf32>
    %9 = vector.shape_cast %6 : vector<48x256xf32> to vector<1x48x256xf32>
    tpu.vector_store %arg5[%c0_6, %c0_7, %c0_8], %9 {strides = array<i32>} : memref<1x48x256xf32, #tpu.memory_space<vmem>>, vector<1x48x256xf32>,
    return
  }
  func.func @transform_0(%arg0: i32, %arg1: i32) -> (i32, i32, i32) {
    %c0_i32 = arith.constant 0 : i32
    %c0_i32_0 = arith.constant 0 : i32
    return %arg0, %c0_i32, %arg1 : i32, i32, i32
  }
  func.func @transform_1(%arg0: i32, %arg1: i32) -> (i32, i32) {
    %c0_i32 = arith.constant 0 : i32
    %c0_i32_0 = arith.constant 0 : i32
    %c0_i32_1 = arith.constant 0 : i32
    return %c0_i32, %c0_i32_0 : i32, i32
  }
  func.func @transform_2(%arg0: i32, %arg1: i32) -> (i32, i32) {
    %c0_i32 = arith.constant 0 : i32
    %c0_i32_0 = arith.constant 0 : i32
    %c0_i32_1 = arith.constant 0 : i32
    return %c0_i32, %c0_i32_0 : i32, i32
  }
  func.func @transform_3(%arg0: i32, %arg1: i32) -> (i32, i32, i32) {
    %c0_i32 = arith.constant 0 : i32
    %c0_i32_0 = arith.constant 0 : i32
    return %arg0, %c0_i32, %arg1 : i32, i32, i32
  }
}

</mosaic_0001>

<bundles_post_ra>
// kernel: tpu_custom_call.1
= control target key start
LH: loop header
LB: loop body
LE: loop exit
PB: predicated region body
PF: predicated region fallthrough
CT: control target
= control target key end

     0   :  { %8 = vsyncpa [#allocation3], 0  ;;  %s975_s0 = inlined_call_operand.hbm [shape: f32[2,64,256], index: 0, kind: input, shape index: {}]   ;;  %s976_s1 = inlined_call_operand.vmem [shape: f32[48,64], index: 1, kind: input, shape index: {}]   ;;  %s977_s2 = inlined_call_operand.vmem [shape: f32[48,1], index: 2, kind: input, shape index: {}]   ;;  %s978_s3 = inlined_call_operand.hbm [shape: f32[2,48,256], index: 3, kind: output, shape index: {}]  }
   0x1   :  { %10 = vsyncpa [#allocation3 + $0x1], 0 }
   0x2   :  { %11 = vsyncpa [#allocation4], 0 }
   0x3   :  { %13 = vsyncpa [#allocation4 + $0x1], 0  ;;  %s747_s12 = smov 0   ;;  %s749_s13 = smov 0  }
   0x4   :  { %s751_s14 = smov 0   ;;  %s753_s15 = smov 0  }
   0x5   :  { %s755_s16 = smov 0   ;;  %s757_s17 = smov 0  }
   0x6 LB: > { %s502_s18 = sadd.s32 4294967295, %s717_s17   ;;  %s503_s19 = sadd.s32 4294967294, %s717_s17   ;;  %s717_s17 = sphi %s757_s17, %s19_s17   ;;  %s713_s16 = sphi %s755_s16, %s989_s16   ;;  %s709_s15 = sphi %s753_s15, %s988_s15   ;;  %s705_s14 = sphi %s751_s14, %s987_s14   ;;  %s701_s13 = sphi %s749_s13, %s986_s13   ;;  %s697_s12 = sphi %s747_s12, %s985_s12  }
   0x7   : > { %s31_s20 = sadd.s32 1, %s713_s16  ;;  %s40_s21 = sadd.s32 1, %s705_s14 }
   0x8   : > { %p33_p0 = scmp.ge.s32.totalorder %s31_s20, 2  ;;  %p47_p1 = scmp.ne.s32.totalorder %s705_s14, %s701_s13 }
   0x9   : > { %p48_p2 = scmp.eq.s32.totalorder %s717_s17, 0  ;;  %p53_p3 = scmp.ne.s32.totalorder %s701_s13, %s697_s12 }
   0xa   : > { %s991_s20 = smov (%p33_p0, %s31_s20), 0  ;;  %p54_p5 = scmp.eq.s32.totalorder %s502_s18, 0 }
   0xb   : > { %p788_p4 = por %p48_p2, %p47_p1  ;;  %s35_s23 = ssub.s32 %s713_s16, %s991_s20 }
   0xc   : > { %p121_p6 = scmp.eq.s32.totalorder %s502_s18, 1  ;;  %p38_p7 = scmp.eq.s32.totalorder %s35_s23, 0 }
   0xd   : > { %p794_p8 = por %p54_p5, %p53_p3  ;;  %p127_p10 = scmp.eq.s32.totalorder %s503_s19, 1 }
   0xe   : > { %p798_p9 = por %p121_p6, %p47_p1  ;;  %p551_p13 = scmp.lt.s32.totalorder %s717_s17, 2 }
   0xf   : > { %s803_s26 = scalar_select %p38_p7, %s705_s14, %s40_s21  }
  0x10   : > { %p805_p11 = por %p127_p10, %p53_p3  ;;  %s153_s28 = sand.u32 1, %s705_s14  }
  0x11   : > { %s506_s29 = sshll.u32 %s153_s28, 7  ;;  %s520_s30 = sshll.u32 %s713_s16, 11 }
  0x12   : > { %s165_s6 = scalar_lea.hbm %s975_s0, %s520_s30  ;;  %s157_s7 = scalar_lea.vmem [#allocation2], %s506_s29 }
  0x13   : > { %s166_s8 = sshll.u32 %s157_s7, 4  ;;  %p818_p0 = pnand %p551_p13, %p788_p4  ;;  %s167_s8 = int_to_ptr.vmem [resolvable:$true] %s166_s8 }
  0x14   : > { %p509_p1 = scmp.ge.s32.totalorder %s717_s17, 1  ;;  %s154_s10 = scalar_lea.sflag [#allocation3], %s153_s28 }
  0x15   : > { %p611_p2 = pneg %p818_p0  ;;  %s622_s11 = scalar_lea.vmem %s167_s8, 2048 }
  0x16   : > { %p623_p3 = scmp.ne.s32.totalorder %s167_s8, %s622_s11  ;;  %s719_s18 = smov [#allocation2]  }
  0x17   : > { %s627_s19 = sshll.u32 %s719_s18, 4  ;;  %s628_s19 = int_to_ptr.vmem [resolvable:$false] %s627_s19 }
  0x18   : > { %p625_p5 = pnand %p623_p3, %p611_p2  ;;  %s629_s21 = scalar_lea.vmem %s628_s19, 4096 }
  0x19   : > { %p630_p7 = scmp.lt.s32.totalorder %s167_s8, %s628_s19  ;;  %p631_p10 = scmp.lt.s32.totalorder %s629_s21, %s622_s11 }
  0x1a   : > { %p626_p6 = pneg %p625_p5 }
  0x1b   : > { %p632_p12 = por %p631_p10, %p630_p7 }
  0x1d   : > { %p633_p4 = pnand %p632_p12, %p626_p6 }
  0x1f   : > { %636 = shalt.err (!%p633_p4)
}
  0x20   : > { %s720_s22 = smov 256   ;;  %s721_s23 = smov 16  }
  0x21   : > { %546 = dma.hbm_to_vmem [thread:$0]  (!%p818_p0), %s165_s6, 2048, %s167_s8, %s154_s10, %s720_s22, %s720_s22, %s721_s23  }
  0x22   : > { %p174_p13 = scmp.lt.s32.totalorder %s717_s17, 3 }
  0x24   : > { %p175_p2 = pnand %p509_p1, %p174_p13 }
  0x25   : > { %s831_s28 = sand.u32 (!%p175_p2), 1, %s701_s13  }
  0x26   : > { %178 = sbr.rel (%p175_p2) target bundleno = 282 (0x11a), region = 32  ;;  %s510_s29 = sshll.u32 (!%p175_p2), %s831_s28, 7 }
  0x27   : > { %s181_s30 = scalar_lea.sflag (!%p175_p2), [#allocation3], %s831_s28  ;;  %s835_s4 = scalar_lea.vmem (!%p175_p2), [#allocation2], %s510_s29 }
  0x2b   : > { %688 = dma.done.wait (%p794_p8), %s181_s30, 2048  }
  0x2c   : > { %690 = vsyncadd (%p794_p8), %s181_s30, 4294965248  ;;  %v722_v0 = vmov 0.0   ;;  %v723_v1 = vmov 0   ;;  %v224_v2 = vld [vmem:[%s835_s4 + $0x78] sm:$0xff]  ;;  %v223_v3 = vld [vmem:[%s835_s4 + $0x70] sm:$0xff]  ;;  %vm267_vm0 = vcmask 523264  }
  0x2d   : > { %350 = vmatprep.mubr.f32.mxu0 %v722_v0  ;;  %368 = vmatprep.mubr.f32.mxu1 %v722_v0  ;;  %v222_v4 = vld [vmem:[%s835_s4 + $0x68] sm:$0xff]  ;;  %v221_v5 = vld [vmem:[%s835_s4 + $0x60] sm:$0xff]  ;;  %v220_v6 = vld [vmem:[%s835_s4 + $0x58] sm:$0xff]  ;;  %s537_s18 = smul.u32 96, %s831_s28  ;;  %s400_s30 = scalar_lea.sflag [#allocation4], %s831_s28 }
  0x2e   : > { %608 = vset.pattern.permute.xlu1 %v723_v1  ;;  %607 = vset.pattern.permute.xlu0 %v723_v1  ;;  %v219_v7 = vld [vmem:[%s835_s4 + $0x50] sm:$0xff]  ;;  %v218_v8 = vld [vmem:[%s835_s4 + $0x48] sm:$0xff]  ;;  %v217_v9 = vld [vmem:[%s835_s4 + $0x40] sm:$0xff]  ;;  %s538_s21 = smul.u32 1536, %s709_s15  ;;  %s724_s24 = smov [#allocation5]  }
  0x2f   : > { %302 = vmatprep.subr.mxu0 %v224_v2  ;;  %521 = vmatprep.subr.mxu1 %v224_v2  ;;  %v216_v10 = vld [vmem:[%s835_s4 + $0x38] sm:$0xff]  ;;  %v215_v11 = vld [vmem:[%s835_s4 + $0x30] sm:$0xff]  ;;  %v214_v12 = vld [vmem:[%s835_s4 + $0x28] sm:$0xff]  ;;  %s906_s19 = scalar_lea.vmem [#allocation5], %s537_s18  ;;  %s641_s5 = sshll.u32 %s724_s24, 4  ;;  %s642_s5 = int_to_ptr.vmem [resolvable:$false] %s641_s5 }
  0x30   : > { %303 = vmatpush1.msra.mxu0 %v223_v3  ;;  %529 = vmatpush1.msra.mxu1 %v223_v3  ;;  %v213_v13 = vld [vmem:[%s835_s4 + $0x20] sm:$0xff]  ;;  %v212_v14 = vld [vmem:[%s835_s4 + $0x18] sm:$0xff]  ;;  %v211_v15 = vld [vmem:[%s835_s4 + $0x10] sm:$0xff]  ;;  %s415_s22 = sshll.u32 %s906_s19, 4  ;;  %s921_s29 = scalar_lea.hbm %s978_s3, %s538_s21  ;;  %s923_s22 = int_to_ptr.vmem [resolvable:$true] %s415_s22 }
  0x31   : > { %304 = vmatprep.subr.mxu0 %v222_v4  ;;  %522 = vmatprep.subr.mxu1 %v222_v4  ;;  %v210_v16 = vld [vmem:[%s835_s4 + $0x8] sm:$0xff]  ;;  %v209_v17 = vld [vmem:[%s835_s4] sm:$0xff]  ;;  %v228_v19 = vld [vmem:[%s976_s1 + $0x18] sm:$0xff]  ;;  %s637_s4 = scalar_lea.vmem %s923_s22, 1536  ;;  %s643_s6 = scalar_lea.vmem %s642_s5, 3072 }
  0x32   : > { %305 = vmatpush1.msra.mxu0 %v221_v5  ;;  %530 = vmatpush1.msra.mxu1 %v221_v5  ;;  %v225_v18 = vld [vmem:[%s976_s1] sm:$0xff]  ;;  %v233_v20 = vld [vmem:[%s977_s2 + $0x10] sm:$0xff]  ;;  %v226_v22 = vld [vmem:[%s976_s1 + $0x8] sm:$0xff]  ;;  %p638_p8 = scmp.ne.s32.totalorder %s923_s22, %s637_s4  ;;  %p644_p1 = scmp.lt.s32.totalorder %s923_s22, %s642_s5 }
  0x33   : > { %306 = vmatprep.subr.mxu0 %v220_v6  ;;  %523 = vmatprep.subr.mxu1 %v220_v6  ;;  %v231_v21 = vld [vmem:[%s977_s2] sm:$0xff]  ;;  %v234_v24 = vld [vmem:[%s977_s2 + $0x18] sm:$0xff]  ;;  %v232_v25 = vld [vmem:[%s977_s2 + $0x8] sm:$0xff]  ;;  %p645_p3 = scmp.lt.s32.totalorder %s643_s6, %s637_s4 }
  0x34   : > { %307 = vmatpush1.msra.mxu0 %v219_v7  ;;  %531 = vmatpush1.msra.mxu1 %v219_v7  ;;  %v229_v23 = vld [vmem:[%s976_s1 + $0x20] sm:$0xff]  ;;  %v227_v26 = vld [vmem:[%s976_s1 + $0x10] sm:$0xff]  ;;  %v230_v27 = vld [vmem:[%s976_s1 + $0x28] sm:$0xff]  ;;  %p639_p12 = pnand %p638_p8, %p798_p9 }
  0x35   : > { %308 = vmatprep.subr.mxu0 %v218_v8  ;;  %524 = vmatprep.subr.mxu1 %v218_v8  ;;  %v236_v28 = vld [vmem:[%s977_s2 + $0x28] sm:$0xff]  ;;  %v235_v29 = vld [vmem:[%s977_s2 + $0x20] sm:$0xff]  ;;  %p646_p5 = por %p645_p3, %p644_p1 }
  0x36   : > { %309 = vmatpush1.msra.mxu0 %v217_v9  ;;  %532 = vmatpush1.msra.mxu1 %v217_v9  ;;  %p640_p0 = pneg %p639_p12 }
  0x37   : > { %310 = vmatprep.subr.mxu0 %v216_v10  ;;  %525 = vmatprep.subr.mxu1 %v216_v10 }
  0x38   : > { %311 = vmatpush1.msra.mxu0 %v215_v11  ;;  %533 = vmatpush1.msra.mxu1 %v215_v11  ;;  %p647_p6 = pnand %p646_p5, %p640_p0 }
  0x39   : > { %312 = vmatprep.subr.mxu0 %v214_v12  ;;  %526 = vmatprep.subr.mxu1 %v214_v12 }
  0x3a   : > { %313 = vmatpush1.msra.mxu0 %v213_v13  ;;  %534 = vmatpush1.msra.mxu1 %v213_v13 }
  0x3b   : > { %314 = vmatprep.subr.mxu0 %v212_v14  ;;  %527 = vmatprep.subr.mxu1 %v212_v14 }
  0x3c   : > { %315 = vmatpush1.msra.mxu0 %v211_v15  ;;  %535 = vmatpush1.msra.mxu1 %v211_v15 }
  0x3d   : > { %316 = vmatprep.subr.mxu0 %v210_v16  ;;  %528 = vmatprep.subr.mxu1 %v210_v16 }
  0x3e   : > { %317 = vmatpush1.msra.mxu0 %v209_v17  ;;  %536 = vmatpush1.msra.mxu1 %v209_v17 }
  0x3f   : > { %511 = vmatmul.mubr.msk.f32.vlgmr.msra.gmra.mxu0 %vm267_vm0, %v225_v18  ;;  %514 = vmatmul.mubr.msk.f32.vlgmr.msra.gmra.mxu1 %vm267_vm0, %v228_v19 }
  0x40   : > { %356 = vmatprep.mubr.f32.mxu0 %v722_v0  ;;  %374 = vmatprep.mubr.f32.mxu1 %v722_v0 }
  0x41   : > { %249 = vperm.xlu1 %608, %v233_v20   ;;  %239 = vperm.xlu0 %607, %v231_v21  }
  0x43   : > { %512 = vmatmul.mubr.msk.f32.gmra.mxu0 %vm267_vm0, %v226_v22  ;;  %515 = vmatmul.mubr.msk.f32.gmra.mxu1 %vm267_vm0, %v229_v23 }
  0x44   : > { %362 = vmatprep.mubr.f32.mxu0 %v722_v0  ;;  %380 = vmatprep.mubr.f32.mxu1 %v722_v0 }
  0x45   : > { %254 = vperm.xlu1 %608, %v234_v24   ;;  %244 = vperm.xlu0 %607, %v232_v25  }
  0x47   : > { %513 = vmatmul.mubr.msk.f32.gmra.mxu0 %vm267_vm0, %v227_v26  ;;  %516 = vmatmul.mubr.msk.f32.gmra.mxu1 %vm267_vm0, %v230_v27 }
  0x49   : > { %264 = vperm.xlu1 %608, %v236_v28   ;;  %259 = vperm.xlu0 %607, %v235_v29  }
  0xbc   : > { %v240_v30 = vpop.permute.xlu0 %239  ;;  %v250_v31 = vpop.permute.xlu1 %249 }
  0xc0   : > { %v245_v32 = vpop.permute.xlu0 %244  ;;  %v255_v33 = vpop.permute.xlu1 %254 }
  0xc4   : > { %v260_v40 = vpop.permute.xlu0 %259  ;;  %v265_v49 = vpop.permute.xlu1 %264 }
  0xff   : > { %v352_v34 = vpop.f32.mrf.mxu0  ;;  %v370_v35 = vpop.f32.mrf.mxu1 }
 0x100   : > { %v353_v36 = vadd.f32 %v352_v34, %v240_v30  ;;  %v371_v37 = vadd.f32 %v370_v35, %v255_v33 }
 0x101   : > { %v354_v38 = vpop.f32.mrf.mxu0  ;;  %v372_v39 = vpop.f32.mrf.mxu1 }
 0x102   : > { %387 = vst [vmem:[%s906_s19] sm:$0xff] %v353_v36  ;;  %393 = vst [vmem:[%s906_s19 + $0x30] sm:$0xff] %v371_v37  ;;  %v355_v41 = vadd.f32 %v354_v38, %v240_v30  ;;  %v373_v42 = vadd.f32 %v372_v39, %v255_v33 }
 0x103   : > { %v358_v43 = vpop.f32.mrf.mxu0  ;;  %v376_v44 = vpop.f32.mrf.mxu1 }
 0x104   : > { %388 = vst [vmem:[%s906_s19 + $0x8] sm:$0xff] %v355_v41  ;;  %394 = vst [vmem:[%s906_s19 + $0x38] sm:$0xff] %v373_v42  ;;  %v359_v45 = vadd.f32 %v358_v43, %v245_v32  ;;  %v377_v46 = vadd.f32 %v376_v44, %v260_v40 }
 0x105   : > { %v360_v47 = vpop.f32.mrf.mxu0  ;;  %v378_v48 = vpop.f32.mrf.mxu1 }
 0x106   : > { %389 = vst [vmem:[%s906_s19 + $0x10] sm:$0xff] %v359_v45  ;;  %395 = vst [vmem:[%s906_s19 + $0x40] sm:$0xff] %v377_v46  ;;  %v361_v50 = vadd.f32 %v360_v47, %v245_v32  ;;  %v379_v51 = vadd.f32 %v378_v48, %v260_v40 }
 0x107   : > { %v364_v52 = vpop.f32.mrf.mxu0  ;;  %v382_v53 = vpop.f32.mrf.mxu1 }
 0x108   : > { %390 = vst [vmem:[%s906_s19 + $0x18] sm:$0xff] %v361_v50  ;;  %396 = vst [vmem:[%s906_s19 + $0x48] sm:$0xff] %v379_v51  ;;  %v365_v54 = vadd.f32 %v364_v52, %v250_v31  ;;  %v383_v55 = vadd.f32 %v382_v53, %v265_v49 }
 0x109   : > { %v366_v56 = vpop.f32.mrf.mxu0  ;;  %v384_v57 = vpop.f32.mrf.mxu1 }
 0x10a   : > { %391 = vst [vmem:[%s906_s19 + $0x20] sm:$0xff] %v365_v54  ;;  %397 = vst [vmem:[%s906_s19 + $0x50] sm:$0xff] %v383_v55  ;;  %v367_v58 = vadd.f32 %v366_v56, %v250_v31  ;;  %v385_v59 = vadd.f32 %v384_v57, %v265_v49 }
 0x10c   : > { %392 = vst [vmem:[%s906_s19 + $0x28] sm:$0xff] %v367_v58  ;;  %398 = vst [vmem:[%s906_s19 + $0x58] sm:$0xff] %v385_v59 }
 0x10d   : > { %650 = shalt.err (!%p647_p6)
}
 0x10e   : > { %s651_s7 = scalar_lea.hbm %s921_s29, 1536  ;;  %s655_s10 = scalar_lea.hbm %s978_s3, 3072 }
 0x10f   : > { %p652_p7 = scmp.ne.s32.totalorder %s921_s29, %s651_s7  ;;  %p656_p13 = scmp.lt.s32.totalorder %s921_s29, %s978_s3 }
 0x110   : > { %p657_p2 = scmp.lt.s32.totalorder %s655_s10, %s651_s7 }
 0x111   : > { %p653_p10 = pnand %p652_p7, %p798_p9 }
 0x112   : > { %p658_p8 = por %p657_p2, %p656_p13 }
 0x113   : > { %p654_p4 = pneg %p653_p10 }
 0x115   : > { %p659_p12 = pnand %p658_p8, %p654_p4 }
 0x117   : > { %662 = shalt.err (!%p659_p12)
}
 0x118   : > { %s725_s19 = smov 256   ;;  %s726_s21 = smov 16  }
 0x119   : > { %541 = dma.vmem_to_hbm [thread:$0]  (%p798_p9), %s923_s22, 1536, %s921_s29, %s400_s30, %s725_s19, %s725_s19, %s726_s21  }
 0x11a PF: > { %s430_s15 = sand.u32 1, %s697_s12   ;;  %p984_p0 = scmp.ge.s32.totalorder %s717_s17, 2 }
 0x11b   : > { %s431_s23 = scalar_lea.sflag [#allocation4], %s430_s15 }
 0x11c   : > { %p548_p1 = pnand %p984_p0, %p805_p11 }
 0x11e   : > { %p549_p3 = pneg %p548_p1 }
 0x120   : > { %692 = dma.done.wait (%p549_p3), %s431_s23, 1536  }
 0x121   : > { %694 = vsyncadd (%p549_p3), %s431_s23, 4294965760  ;;  %s19_s17 = sadd.s32 1, %s717_s17   ;;  %s985_s12 = smov %s701_s13 }
 0x122   : > { %p16_p5 = scmp.ge.s32.totalorder %s19_s17, 4   ;;  %s986_s13 = smov %s705_s14 }
 0x123   : > { %s987_s14 = smov %s803_s26  ;;  %s988_s15 = smov %s713_s16 }
 0x124   : > { %s989_s16 = smov %s991_s20  ;;  %18 = sbr.rel (!%p16_p5) target bundleno = 6 (0x6), region = 77 }
 0x129   :  { %436 = vsyncpa [#allocation3], 1 }
 0x12a   :  { %438 = vsyncpa [#allocation3 + $0x1], 1 }
 0x12b   :  { %439 = vsyncpa [#allocation4], 1 }
 0x12c   :  { %441 = vsyncpa [#allocation4 + $0x1], 1 }

</bundles_post_ra>
